<compile_context>
chip_gen: v6e
topology: v6e:2x2x1
jax: 0.10.0
libtpu: 0.0.40
codegen_flags: <defaults>
</compile_context>

<pallas_src>
import functools

import jax
import jax.numpy as jnp
from jax.experimental import pallas as pl
from jax.experimental.pallas import tpu as pltpu
from jax.scipy.linalg import block_diag


# ---------------------------------------------------------------------------
# Fused I2CSA (+ optional I2CTA) kernel.  Block: x_ref is (Bt, C, L).
#   I2CSA: avg/max pool over L (lane reduce) -> block-diag fc1 -> ReLU -> fc2
#          (two batched dot chains) -> sigmoid(avg_out + max_out)
#          -> x * gate (lane broadcast).
#   I2CTA: per-group channel mean (MXU, constant (G,C) averaging matrix) and
#          max (sublane reduce) -> grouped conv1d(k=3, pad=1) along L ->
#          sigmoid -> expand over group_width channels (MXU, constant (C,G)
#          one-hot matrix).  Like the PyTorch module, the TA path RETURNS the
#          expanded attention map (it does not multiply it back into x).
# ---------------------------------------------------------------------------
def _i2c_attention_kernel(x_ref, w1t_ref, w2t_ref, wca_ref, wcm_ref,
                          ga_ref, ge_ref, o_ref, *, sa, ta):
    Bt, C, L = x_ref.shape
    G = ga_ref.shape[0]
    Gw = C // G

    x = x_ref[...].astype(jnp.float32)                       # (Bt, C, L)
    out = x

    if sa:
        # Pool over L: last-axis (lane) reduce, no reshape / relayout needed.
        y_avg = jnp.mean(x, axis=-1)                          # (Bt, C)
        y_max = jnp.max(x, axis=-1)                           # (Bt, C)
        w1t = w1t_ref[...]                                    # (C,  C1)
        w2t = w2t_ref[...]                                    # (C1, C)
        # fc2(relu(fc1(.))) for avg and max pools, batched over the batch tile.
        h_a = jnp.maximum(
            jnp.dot(y_avg, w1t, preferred_element_type=jnp.float32), 0.0)
        o_a = jnp.dot(h_a, w2t, preferred_element_type=jnp.float32)   # (Bt, C)
        h_m = jnp.maximum(
            jnp.dot(y_max, w1t, preferred_element_type=jnp.float32), 0.0)
        o_m = jnp.dot(h_m, w2t, preferred_element_type=jnp.float32)   # (Bt, C)
        gate = jax.nn.sigmoid(o_a + o_m)                      # (Bt, C)
        # Expansion over L is a plain lane broadcast (no relayout).
        out = x * gate[:, :, None]                            # (Bt, C, L)

    if ta:
        # Per-group channel mean via a constant (G, C) averaging matrix on the
        # MXU (avoids the Gw<8 sublane repack for the mean path).
        ga = jnp.broadcast_to(ga_ref[...], (Bt, G, C))
        avg = jnp.einsum('bgc,bcl->bgl', ga, out,
                         preferred_element_type=jnp.float32)  # (Bt, G, L)
        # Per-group channel max: small sublane reduce over Gw.
        mx = jnp.max(out.reshape(Bt, G, Gw, L), axis=2)       # (Bt, G, L)

        def conv3(v, taps):
            # k=3, padding=1 cross-correlation along L.  Zero-padded lane
            # shifts on a tiny (Bt, G, L) operand (the zeros ARE the conv
            # padding, so no edge masks are needed).
            z = jnp.zeros_like(v[..., :1])
            v_m1 = jnp.concatenate([z, v[..., :-1]], axis=-1)   # value at l-1
            v_p1 = jnp.concatenate([v[..., 1:], z], axis=-1)    # value at l+1
            return taps[:, 0:1] * v_m1 + taps[:, 1:2] * v + taps[:, 2:3] * v_p1

        acc = conv3(avg, wca_ref[...]) + conv3(mx, wcm_ref[...])   # (Bt, G, L)
        sig = jax.nn.sigmoid(acc)                             # (Bt, G, L)
        # Expand each group's map over its group_width channels via a constant
        # one-hot (C, G) matrix on the MXU (no sublane-splitting reshape).
        ge = jnp.broadcast_to(ge_ref[...], (Bt, C, G))
        out = jnp.einsum('bcg,bgl->bcl', ge, sig,
                         preferred_element_type=jnp.float32)  # (Bt, C, L)

    o_ref[...] = out.astype(o_ref.dtype)


# ---------------------------------------------------------------------------
# Generation-aware VMEM planning + batch tiling.
# ---------------------------------------------------------------------------
def _device_vmem_plan():
    """Returns (block_budget_bytes, vmem_limit_cap_bytes) for this TPU gen."""
    kind = ""
    try:
        kind = jax.devices()[0].device_kind.lower()
    except Exception:
        pass
    if "v6" in kind:
        return 8 << 20, 100 << 20      # 128 MiB physical VMEM
    if "v5 lite" in kind or "v5e" in kind:
        return 4 << 20, 64 << 20       # 128 MiB physical, 16 MiB scoped default
    if "v7" in kind:
        return 3 << 20, 48 << 20       # 64 MiB physical per TensorCore
    return 3 << 20, 48 << 20           # unknown: be conservative


def _pick_batch_tile(B, C, L, itemsize, block_budget_bytes):
    """Largest divisor Bt of B whose (Bt, C, L) block fits the budget,
    preferring >= 2 grid steps so 'parallel' can shard across TensorCores.
    Bt=1 is always legal (we never tile C or L, so the per-batch block is the
    minimum granularity)."""
    per_batch = C * L * max(itemsize, 4)   # f32 temporaries dominate in VMEM
    cap = max(1, block_budget_bytes // per_batch)
    divisors = [d for d in range(1, B + 1) if B % d == 0]
    multi = [d for d in divisors if d <= cap and B // d >= 2]
    if multi:
        return max(multi)
    fitting = [d for d in divisors if d <= cap]
    if fitting:
        return max(fitting)
    return 1


# ---------------------------------------------------------------------------
# Wrapper.
# ---------------------------------------------------------------------------
def i2c_attention_pallas(x, w1_dense, w2_dense, wc, groups, *,
                         SA=True, TA=False,
                         block_budget_bytes=None, vmem_limit_bytes=None):
    """Fused I2CAttention forward.  x: (B, C, L), NCL layout (dtype preserved)."""
    if not (SA or TA):
        return x
    B, C, L = x.shape
    G = groups
    Gw = C // G

    budget, vmem_cap = _device_vmem_plan()
    if block_budget_bytes is None:
        block_budget_bytes = budget
    itemsize = jnp.dtype(x.dtype).itemsize
    Bt = _pick_batch_tile(B, C, L, itemsize, block_budget_bytes)
    num_tiles = B // Bt

    # Tiny, one-time weight/constant prep (constant-folded under jit).
    w1t = jnp.asarray(w1_dense, jnp.float32).T               # (C,  C1)
    w2t = jnp.asarray(w2_dense, jnp.float32).T               # (C1, C)
    wca = jnp.asarray(wc[:, 0, :], jnp.float32)              # (G, 3) avg taps
    wcm = jnp.asarray(wc[:, 1, :], jnp.float32)              # (G, 3) max taps
    gidx = jnp.arange(C) // Gw
    ge = (gidx[:, None] == jnp.arange(G)[None, :]).astype(jnp.float32)  # (C, G)
    ga = ge.T / float(Gw)                                               # (G, C)

    # VMEM limit derived from the chosen block size, capped per generation.
    block_in = Bt * C * L * itemsize
    block_f32 = Bt * C * L * 4
    w_bytes = 4 * int(w1t.size + w2t.size + wca.size + wcm.size + ga.size + ge.size)
    need = 4 * block_in + 6 * block_f32 + 2 * w_bytes + (2 << 20)
    if vmem_limit_bytes is None:
        vmem_limit_bytes = int(min(vmem_cap, max(need, 16 << 20)))

    kernel = functools.partial(_i2c_attention_kernel, sa=SA, ta=TA)
    return pl.pallas_call(
        kernel,
        out_shape=jax.ShapeDtypeStruct((B, C, L), x.dtype),
        grid=(num_tiles,),
        in_specs=[
            pl.BlockSpec((Bt, C, L), lambda i: (i, 0, 0)),
            pl.BlockSpec(w1t.shape, lambda i: (0, 0)),
            pl.BlockSpec(w2t.shape, lambda i: (0, 0)),
            pl.BlockSpec(wca.shape, lambda i: (0, 0)),
            pl.BlockSpec(wcm.shape, lambda i: (0, 0)),
            pl.BlockSpec(ga.shape, lambda i: (0, 0)),
            pl.BlockSpec(ge.shape, lambda i: (0, 0)),
        ],
        out_specs=pl.BlockSpec((Bt, C, L), lambda i: (i, 0, 0)),
        compiler_params=pltpu.CompilerParams(
            dimension_semantics=("parallel",),
            vmem_limit_bytes=vmem_limit_bytes,
        ),
    )(x, w1t, w2t, wca, wcm, ga, ge)


# ---------------------------------------------------------------------------
# Parameter init (deterministic, kaiming-normal fan_in, no bias), matching the
# PyTorch grouped 1x1 convs and spatialAttConv (k=3, groups=G).
# Note: nn.Conv1d(C, (C//reduction)*G, 1, groups=G) gives each of the G groups
# Cr = C//reduction hidden outputs, so the dense block-diag fc1 is (Cr*G, C)
# and fc2 is (C, Cr*G) -- this matches the PyTorch module exactly.
# ---------------------------------------------------------------------------
def init_params(key, channels, reduction, groups_sa, groups_ta):
    Cr = channels // reduction
    Gw_sa = channels // groups_sa
    k1, k2, k3 = jax.random.split(key, 3)
    w1_g = jax.random.normal(k1, (groups_sa, Cr, Gw_sa), jnp.float32) * jnp.sqrt(2.0 / Gw_sa)
    w2_g = jax.random.normal(k2, (groups_sa, Gw_sa, Cr), jnp.float32) * jnp.sqrt(2.0 / Cr)
    w1_dense = block_diag(*[w1_g[g] for g in range(groups_sa)])   # (Cr*G, C)
    w2_dense = block_diag(*[w2_g[g] for g in range(groups_sa)])   # (C, Cr*G)
    # spatialAttConv weight: (G, 2, 3), fan_in = 2*3
    wc = jax.random.normal(k3, (groups_ta, 2, 3), jnp.float32) * jnp.sqrt(2.0 / 6.0)
    return w1_dense, w2_dense, wc


# ---------------------------------------------------------------------------
# Pure-JAX references for correctness checking.
# ---------------------------------------------------------------------------
def i2csa_ref(x, w1_dense, w2_dense):
    y_avg = x.mean(axis=2, keepdims=True)
    y_max = x.max(axis=2, keepdims=True)

    def fc(y):
        h = jnp.maximum(jnp.einsum('oc,bcl->bol', w1_dense, y,
                                   precision=jax.lax.Precision.HIGHEST), 0.0)
        return jnp.einsum('co,bol->bcl', w2_dense, h,
                          precision=jax.lax.Precision.HIGHEST)

    gate = jax.nn.sigmoid(fc(y_avg) + fc(y_max))
    return x * gate


def i2cta_ref(x, wc, groups):
    B, C, L = x.shape
    Gw = C // groups
    xg = x.reshape(B, groups, Gw, L)
    avg = xg.mean(axis=2)
    mx = xg.max(axis=2)
    pad_a = jnp.pad(avg, ((0, 0), (0, 0), (1, 1)))
    pad_m = jnp.pad(mx, ((0, 0), (0, 0), (1, 1)))
    out = jnp.zeros((B, groups, L), jnp.float32)
    for k in range(3):
        out = out + wc[None, :, 0, k, None] * pad_a[:, :, k:k + L]
        out = out + wc[None, :, 1, k, None] * pad_m[:, :, k:k + L]
    sig = jax.nn.sigmoid(out)
    return jnp.repeat(sig, Gw, axis=1)


def i2c_attention_ref(x, w1_dense, w2_dense, wc, groups, SA=True, TA=False):
    out = i2csa_ref(x, w1_dense, w2_dense) if SA else x
    if TA:
        out = i2cta_ref(out, wc, groups)
    return out


if __name__ == "__main__":
    # Small shapes consistent with the module: channels divisible by groups(=11)
    # and by reduction(=4).
    B, C, L = 2, 44, 16
    reduction, groups = 4, 11   # I2CSA(in_planes, reduction, groups); I2CTA groups=11

    key = jax.random.PRNGKey(0)
    kx, kp = jax.random.split(key)
    x = jax.random.normal(kx, (B, C, L), jnp.float32)
    w1_dense, w2_dense, wc = init_params(kp, C, reduction, groups, groups)

    # Default config (SA=True, TA=False).
    out_sa = jax.block_until_ready(
        i2c_attention_pallas(x, w1_dense, w2_dense, wc, groups, SA=True, TA=False))
    ref_sa = i2c_attention_ref(x, w1_dense, w2_dense, wc, groups, SA=True, TA=False)
    assert jnp.allclose(out_sa, ref_sa, rtol=1e-5, atol=1e-5), "SA mismatch"

    # Full config (SA=True, TA=True) exercises the fused SA+TA path.
    out_full = jax.block_until_ready(
        i2c_attention_pallas(x, w1_dense, w2_dense, wc, groups, SA=True, TA=True))
    ref_full = i2c_attention_ref(x, w1_dense, w2_dense, wc, groups, SA=True, TA=True)
    assert jnp.allclose(out_full, ref_full, rtol=1e-5, atol=1e-5), "SA+TA mismatch"

    print("KERNEL_OK")
</pallas_src>

<mosaic_0001>
module attributes {stable_mosaic.version = 11 : i64} {
  func.func @_i2c_attention_kernel(%arg0: i32, %arg1: memref<1x44x16xf32, #tpu.memory_space<vmem>>, %arg2: memref<44x121xf32, #tpu.memory_space<vmem>>, %arg3: memref<121x44xf32, #tpu.memory_space<vmem>>, %arg4: memref<11x3xf32, #tpu.memory_space<vmem>>, %arg5: memref<11x3xf32, #tpu.memory_space<vmem>>, %arg6: memref<11x44xf32, #tpu.memory_space<vmem>>, %arg7: memref<44x11xf32, #tpu.memory_space<vmem>>, %arg8: memref<1x44x16xf32, #tpu.memory_space<vmem>>) attributes {dimension_semantics = [#tpu.dimension_semantics<parallel>], iteration_bounds = array<i64: 2>, scalar_prefetch = 0 : i64, scratch_operands = 0 : i64, tpu.core_type = #tpu.core_type<tc>, window_params = [{transform_indices = @transform_0, window_bounds = array<i64: 1, 44, 16>}, {pipeline_mode = #tpu.pipeline_mode<synchronous>, transform_indices = @transform_1, window_bounds = array<i64: 44, 121>}, {pipeline_mode = #tpu.pipeline_mode<synchronous>, transform_indices = @transform_2, window_bounds = array<i64: 121, 44>}, {pipeline_mode = #tpu.pipeline_mode<synchronous>, transform_indices = @transform_3, window_bounds = array<i64: 11, 3>}, {pipeline_mode = #tpu.pipeline_mode<synchronous>, transform_indices = @transform_4, window_bounds = array<i64: 11, 3>}, {pipeline_mode = #tpu.pipeline_mode<synchronous>, transform_indices = @transform_5, window_bounds = array<i64: 11, 44>}, {pipeline_mode = #tpu.pipeline_mode<synchronous>, transform_indices = @transform_6, window_bounds = array<i64: 44, 11>}, {transform_indices = @transform_7, window_bounds = array<i64: 1, 44, 16>}]} {
    %c0 = arith.constant 0 : index
    %c0_0 = arith.constant 0 : index
    %c0_1 = arith.constant 0 : index
    %0 = vector.load %arg1[%c0, %c0_0, %c0_1] : memref<1x44x16xf32, #tpu.memory_space<vmem>>, vector<1x44x16xf32>
    %cst = arith.constant dense<0.000000e+00> : vector<1x44xf32>
    %1 = vector.multi_reduction <add>, %0, %cst [2] : vector<1x44x16xf32> to vector<1x44xf32>
    %cst_2 = arith.constant 1.600000e+01 : f32
    %2 = vector.broadcast %cst_2 : f32 to vector<1x44xf32>
    %3 = arith.divf %1, %2 : vector<1x44xf32>
    %cst_3 = arith.constant dense<0xFF800000> : vector<1x44xf32>
    %4 = vector.multi_reduction <maximumf>, %0, %cst_3 [2] : vector<1x44x16xf32> to vector<1x44xf32>
    %c0_4 = arith.constant 0 : index
    %c0_5 = arith.constant 0 : index
    %5 = vector.load %arg2[%c0_4, %c0_5] : memref<44x121xf32, #tpu.memory_space<vmem>>, vector<44x121xf32>
    %c0_6 = arith.constant 0 : index
    %c0_7 = arith.constant 0 : index
    %6 = vector.load %arg3[%c0_6, %c0_7] : memref<121x44xf32, #tpu.memory_space<vmem>>, vector<121x44xf32>
    %cst_8 = arith.constant dense<0.000000e+00> : vector<1x121xf32>
    %7 = tpu.matmul %3, %5, %cst_8 {dimension_numbers = #tpu.dot_dimension_numbers<[1], [0], [0], [1], [0, 0, 1, 1], [], []>} : vector<1x44xf32>, vector<44x121xf32>, vector<1x121xf32> -> vector<1x121xf32>
    %cst_9 = arith.constant 0.000000e+00 : f32
    %8 = vector.broadcast %cst_9 : f32 to vector<1x121xf32>
    %9 = arith.maximumf %7, %8 : vector<1x121xf32>
    %cst_10 = arith.constant dense<0.000000e+00> : vector<1x44xf32>
    %10 = tpu.matmul %9, %6, %cst_10 {dimension_numbers = #tpu.dot_dimension_numbers<[1], [0], [0], [1], [0, 0, 1, 1], [], []>} : vector<1x121xf32>, vector<121x44xf32>, vector<1x44xf32> -> vector<1x44xf32>
    %cst_11 = arith.constant dense<0.000000e+00> : vector<1x121xf32>
    %11 = tpu.matmul %4, %5, %cst_11 {dimension_numbers = #tpu.dot_dimension_numbers<[1], [0], [0], [1], [0, 0, 1, 1], [], []>} : vector<1x44xf32>, vector<44x121xf32>, vector<1x121xf32> -> vector<1x121xf32>
    %cst_12 = arith.constant 0.000000e+00 : f32
    %12 = vector.broadcast %cst_12 : f32 to vector<1x121xf32>
    %13 = arith.maximumf %11, %12 : vector<1x121xf32>
    %cst_13 = arith.constant dense<0.000000e+00> : vector<1x44xf32>
    %14 = tpu.matmul %13, %6, %cst_13 {dimension_numbers = #tpu.dot_dimension_numbers<[1], [0], [0], [1], [0, 0, 1, 1], [], []>} : vector<1x121xf32>, vector<121x44xf32>, vector<1x44xf32> -> vector<1x44xf32>
    %15 = arith.addf %10, %14 : vector<1x44xf32>
    %16 = arith.negf %15 : vector<1x44xf32>
    %17 = math.exp %16 : vector<1x44xf32>
    %cst_14 = arith.constant 1.000000e+00 : f32
    %18 = vector.broadcast %cst_14 : f32 to vector<1x44xf32>
    %19 = arith.addf %18, %17 : vector<1x44xf32>
    %20 = arith.divf %18, %19 : vector<1x44xf32>
    %21 = vector.shape_cast %20 : vector<1x44xf32> to vector<1x44x1xf32>
    %22 = vector.broadcast %21 : vector<1x44x1xf32> to vector<1x44x16xf32>
    %23 = arith.mulf %0, %22 : vector<1x44x16xf32>
    %c0_15 = arith.constant 0 : index
    %c0_16 = arith.constant 0 : index
    %c0_17 = arith.constant 0 : index
    %24 = vector.load %arg8[%c0_15, %c0_16, %c0_17] : memref<1x44x16xf32, #tpu.memory_space<vmem>>, vector<1x44x16xf32>
    tpu.vector_store %arg8[%c0_15, %c0_16, %c0_17], %23 {strides = array<i32>} : memref<1x44x16xf32, #tpu.memory_space<vmem>>, vector<1x44x16xf32>,
    return
  }
  func.func @transform_0(%arg0: i32) -> (i32, i32, i32) {
    %c0_i32 = arith.constant 0 : i32
    %c0_i32_0 = arith.constant 0 : i32
    %c0_i32_1 = arith.constant 0 : i32
    return %arg0, %c0_i32, %c0_i32_0 : i32, i32, i32
  }
  func.func @transform_1(%arg0: i32) -> (i32, i32) {
    %c0_i32 = arith.constant 0 : i32
    %c0_i32_0 = arith.constant 0 : i32
    %c0_i32_1 = arith.constant 0 : i32
    return %c0_i32, %c0_i32_0 : i32, i32
  }
  func.func @transform_2(%arg0: i32) -> (i32, i32) {
    %c0_i32 = arith.constant 0 : i32
    %c0_i32_0 = arith.constant 0 : i32
    %c0_i32_1 = arith.constant 0 : i32
    return %c0_i32, %c0_i32_0 : i32, i32
  }
  func.func @transform_3(%arg0: i32) -> (i32, i32) {
    %c0_i32 = arith.constant 0 : i32
    %c0_i32_0 = arith.constant 0 : i32
    %c0_i32_1 = arith.constant 0 : i32
    return %c0_i32, %c0_i32_0 : i32, i32
  }
  func.func @transform_4(%arg0: i32) -> (i32, i32) {
    %c0_i32 = arith.constant 0 : i32
    %c0_i32_0 = arith.constant 0 : i32
    %c0_i32_1 = arith.constant 0 : i32
    return %c0_i32, %c0_i32_0 : i32, i32
  }
  func.func @transform_5(%arg0: i32) -> (i32, i32) {
    %c0_i32 = arith.constant 0 : i32
    %c0_i32_0 = arith.constant 0 : i32
    %c0_i32_1 = arith.constant 0 : i32
    return %c0_i32, %c0_i32_0 : i32, i32
  }
  func.func @transform_6(%arg0: i32) -> (i32, i32) {
    %c0_i32 = arith.constant 0 : i32
    %c0_i32_0 = arith.constant 0 : i32
    %c0_i32_1 = arith.constant 0 : i32
    return %c0_i32, %c0_i32_0 : i32, i32
  }
  func.func @transform_7(%arg0: i32) -> (i32, i32, i32) {
    %c0_i32 = arith.constant 0 : i32
    %c0_i32_0 = arith.constant 0 : i32
    %c0_i32_1 = arith.constant 0 : i32
    return %arg0, %c0_i32, %c0_i32_0 : i32, i32, i32
  }
}

</mosaic_0001>

<bundles_post_ra>
// kernel: tpu_custom_call.1
= control target key start
LH: loop header
LB: loop body
LE: loop exit
PB: predicated region body
PF: predicated region fallthrough
CT: control target
= control target key end

     0   :  { %s1067_s24 = smov 0   ;;  %s1278_s0 = inlined_call_operand.vmem [shape: f32[2,44,16], index: 0, kind: input, shape index: {}]   ;;  %s1279_s1 = inlined_call_operand.vmem [shape: f32[44,121], index: 1, kind: input, shape index: {}]   ;;  %s1280_s2 = inlined_call_operand.vmem [shape: f32[121,44], index: 2, kind: input, shape index: {}]   ;;  %s1281_s3 = inlined_call_operand.vmem [shape: f32[11,3], index: 3, kind: input, shape index: {}]   ;;  %s1282_s4 = inlined_call_operand.vmem [shape: f32[11,3], index: 4, kind: input, shape index: {}]   ;;  %s1283_s5 = inlined_call_operand.vmem [shape: f32[11,44], index: 5, kind: input, shape index: {}]   ;;  %s1284_s6 = inlined_call_operand.vmem [shape: f32[44,11], index: 6, kind: input, shape index: {}]   ;;  %s1285_s7 = inlined_call_operand.vmem [shape: f32[2,44,16], index: 7, kind: output, shape index: {}]  }
   0x1 LB: > { %s836_s3 = sadd.s32 4294967295, %s1023_s24   ;;  %p840_p0 = scmp.ge.s32.totalorder %s1023_s24, 1  ;;  %s1023_s24 = sphi %s1067_s24, %s17_s24  }
   0x2   : > { %p237_p1 = scmp.lt.s32.totalorder %s1023_s24, 3 }
   0x4   : > { %p238_p2 = pnand %p840_p0, %p237_p1 }
   0x5   : > { %p269_p3 = scmp.lt.s32.totalorder (!%p238_p2), %s836_s3, 1 }
   0x6   : > { %241 = sbr.rel (%p238_p2) target bundleno = 733 (0x2dd), region = 48 }
   0xb   : > { %s1287_s3 = smov (!%p269_p3, %s836_s3), 1  ;;  %vm285_vm0 = vcmask 130048   ;;  %vm301_vm1 = vcmask 125952   ;;  %v1025_v18 = vmov 0.0   ;;  %v335_v19 = vld [vmem:[%s1279_s1 + $0x28] sm:$0xf]  ;;  %v358_v25 = vlaneseq }
   0xc   : > { %s1002_s4 = smul.u32 48, %s1287_s3  ;;  %902 = vmatprep.subr.mxu0 %v1025_v18  ;;  %vm402_vm2 = vcmask 1043456   ;;  %917 = vmatprep.subr.mxu1 %v1025_v18  ;;  %v334_v20 = vld [vmem:[%s1279_s1 + $0x20] sm:$0xff]  ;;  %v333_v21 = vld [vmem:[%s1279_s1 + $0x18] sm:$0xff]  ;;  %v332_v22 = vld [vmem:[%s1279_s1 + $0x10] sm:$0xff]  ;;  %vm1026_vm3 = vmmov 0  }
   0xd   : > { %903 = vmatpush3.msk.msra.mxu0 %vm402_vm2, %v335_v19  ;;  %918 = vmatpush3.msk.msra.mxu1 %vm402_vm2, %v335_v19  ;;  %v331_v23 = vld [vmem:[%s1279_s1 + $0x8] sm:$0xff]  ;;  %v330_v24 = vld [vmem:[%s1279_s1] sm:$0xff]  ;;  %v359_v26 = vand.u32 127, %v358_v25  ;;  %v1155_v30 = vshrl.u32 %v358_v25, 7  ;;  %vm369_vm4 = vcmask 130112   ;;  %vm376_vm5 = vcmask 195712  }
   0xe   : > { %s273_s25 = scalar_lea.vmem %s1278_s0, %s1002_s4  ;;  %904 = vmatprep.subr.mxu0 %v1025_v18  ;;  %919 = vmatprep.subr.mxu1 %v1025_v18  ;;  %vm383_vm6 = vcmask 261312   ;;  %vm390_vm7 = vcmask 326912   ;;  %vm397_vm8 = vcmask 392512   ;;  %vm399_vm9 = vcmask 359424   ;;  %v348_v25 = vld [vmem:[%s1280_s2 + $0x60] sm:$0xff]  ;;  %s278_s6 = scalar_lea.vmem %s1285_s7, %s1002_s4 }
   0xf   : > { %v1083_v0 = vld [vmem:[%s273_s25 + $0x10] sm:$0xff]  ;;  %v1085_v1 = vld [vmem:[%s273_s25] sm:$0xff]  ;;  %v1087_v2 = vld [vmem:[%s273_s25 + $0x18] sm:$0xff]  ;;  %905 = vmatpush3.msra.mxu0 %v334_v20  ;;  %920 = vmatpush3.msra.mxu1 %v334_v20  ;;  %v364_v29 = vadd.s32 4294967288, %v359_v26  ;;  %v371_v35 = vadd.s32 4294967280, %v359_v26  ;;  %v362_v36 = vsub.s32 %v359_v26, %v1155_v30  ;;  %v378_v38 = vadd.s32 4294967272, %v359_v26 }
  0x10   : > { %v292_v3 = vsel %vm285_vm0, %v1083_v0, 0.0  ;;  %v286_v4 = vsel %vm285_vm0, %v1085_v1, 0.0  ;;  %v1093_v5 = vld [vmem:[%s273_s25 + $0x8] sm:$0xff]  ;;  %v295_v6 = vsel %vm285_vm0, %v1087_v2, 0.0  ;;  %v312_v9 = vsel %vm285_vm0, %v1085_v1, -inf  ;;  %v1103_v10 = vld [vmem:[%s273_s25 + $0x20] sm:$0xff]  ;;  %906 = vmatprep.subr.mxu0 %v1025_v18  ;;  %921 = vmatprep.subr.mxu1 %v1025_v18 }
  0x11   : > { %293 = vadd.xlane.f32.xlu1 %v292_v3  ;;  %287 = vadd.xlane.f32.xlu0 %v286_v4  ;;  %v289_v7 = vsel %vm285_vm0, %v1093_v5, 0.0  ;;  %v315_v8 = vsel %vm285_vm0, %v1093_v5, -inf  ;;  %v318_v11 = vsel %vm285_vm0, %v1083_v0, -inf  ;;  %v298_v12 = vsel %vm285_vm0, %v1103_v10, 0.0  ;;  %v1109_v13 = vld [vmem:[%s273_s25 + $0x28] sm:$0xf] }
  0x12   : > { %v321_v14 = vsel %vm285_vm0, %v1087_v2, -inf  ;;  %v302_v15 = vsel %vm301_vm1, %v1109_v13, 0.0  ;;  %v324_v16 = vsel %vm285_vm0, %v1103_v10, -inf  ;;  %v327_v17 = vsel %vm301_vm1, %v1109_v13, -inf  ;;  %907 = vmatpush3.msra.mxu0 %v333_v21  ;;  %922 = vmatpush3.msra.mxu1 %v333_v21  ;;  %v351_v20 = vld [vmem:[%s1280_s2 + $0x78] sm:$0x1] }
  0x13   : > { %908 = vmatprep.subr.mxu0 %v1025_v18  ;;  %923 = vmatprep.subr.mxu1 %v1025_v18  ;;  %v367_v33 = vsub.s32 %v364_v29, %v1155_v30  ;;  %v385_v41 = vadd.s32 4294967264, %v359_v26  ;;  %v374_v43 = vsub.s32 %v371_v35, %v1155_v30  ;;  %v381_v46 = vsub.s32 %v378_v38, %v1155_v30  ;;  %v344_v29 = vld [vmem:[%s1280_s2 + $0x40] sm:$0xff]  ;;  %v339_v35 = vld [vmem:[%s1280_s2 + $0x18] sm:$0xff] }
  0x14   : > { %909 = vmatpush3.msra.mxu0 %v332_v22  ;;  %924 = vmatpush3.msra.mxu1 %v332_v22  ;;  %v392_v48 = vadd.s32 4294967256, %v359_v26  ;;  %vm589_vm10 = vcmask 1040384   ;;  %v347_v26 = vld [vmem:[%s1280_s2 + $0x58] sm:$0xff]  ;;  %v336_v38 = vld [vmem:[%s1280_s2] sm:$0xff]  ;;  %vm585_vm11 = vcmask 990208  }
  0x15   : > { %296 = vadd.xlane.f32.xlu1 %v295_v6  ;;  %290 = vadd.xlane.f32.xlu0 %v289_v7  ;;  %v388_v50 = vsub.s32 %v385_v41, %v1155_v30 }
  0x16   : > { %910 = vmatprep.subr.mxu0 %v1025_v18  ;;  %925 = vmatprep.subr.mxu1 %v1025_v18  ;;  %v395_v56 = vsub.s32 %v392_v48, %v1155_v30 }
  0x17   : > { %911 = vmatpush3.msra.mxu0 %v331_v23  ;;  %926 = vmatpush3.msra.mxu1 %v331_v23  ;;  %v350_v23 = vld [vmem:[%s1280_s2 + $0x70] sm:$0xff] }
  0x18   : > { %912 = vmatprep.subr.mxu0 %v1025_v18  ;;  %914 = vmatprep.mubr.msk.f32.mxu0 %vm1026_vm3, %v1025_v18 }
  0x19   : > { %316 = vmax.xlane.f32.xlu1 %v315_v8  ;;  %313 = vmax.xlane.f32.xlu0 %v312_v9 }
  0x1a   : > { %913 = vmatpush3.msra.mxu0 %v330_v24  ;;  %927 = vmatprep.subr.mxu1 %v1025_v18 }
  0x1b   : > { %928 = vmatpush3.msra.mxu1 %v330_v24  ;;  %929 = vmatprep.mubr.msk.f32.mxu1 %vm1026_vm3, %v1025_v18  ;;  %v349_v24 = vld [vmem:[%s1280_s2 + $0x68] sm:$0xff] }
  0x1c   : > { %967 = vmatprep.subr.mxu1 %v1025_v18  ;;  %932 = vmatprep.subr.mxu0 %v1025_v18 }
  0x1d   : > { %319 = vmax.xlane.f32.xlu1 %v318_v11  ;;  %299 = vadd.xlane.f32.xlu0 %v298_v12 }
  0x21   : > { %322 = vmax.xlane.f32.xlu1 %v321_v14  ;;  %303 = vadd.xlane.f32.xlu0 %v302_v15 }
  0x25   : > { %325 = vmax.xlane.f32.xlu0 %v324_v16  ;;  %328 = vmax.xlane.f32.xlu1 %v327_v17 }
  0x9a   : > { %v294_v27 = vpop.xlane.xlu1 %293  ;;  %v288_v28 = vpop.xlane.xlu0 %287 }
  0x9b   : > { %v306_v37 = vmul.f32 0.0625, %v288_v28  ;;  %v308_v44 = vmul.f32 0.0625, %v294_v27  ;;  %v346_v27 = vld [vmem:[%s1280_s2 + $0x50] sm:$0xff]  ;;  %v345_v28 = vld [vmem:[%s1280_s2 + $0x48] sm:$0xff] }
  0x9d   : > { %v363_v45 = vrot.slane %v306_v37, %v362_v36  ;;  %v375_v54 = vrot.slane %v308_v44, %v374_v43  ;;  %v337_v37 = vld [vmem:[%s1280_s2 + $0x8] sm:$0xff] }
  0x9e   : > { %v297_v31 = vpop.xlane.xlu1 %296  ;;  %v291_v32 = vpop.xlane.xlu0 %290 }
  0x9f   : > { %v307_v34 = vmul.f32 0.0625, %v291_v32  ;;  %v309_v47 = vmul.f32 0.0625, %v297_v31  ;;  %v343_v31 = vld [vmem:[%s1280_s2 + $0x38] sm:$0xff]  ;;  %v342_v32 = vld [vmem:[%s1280_s2 + $0x30] sm:$0xff] }
  0xa1   : > { %v368_v42 = vrot.slane %v307_v34, %v367_v33  ;;  %v382_v55 = vrot.slane %v309_v47, %v381_v46  ;;  %v340_v34 = vld [vmem:[%s1280_s2 + $0x20] sm:$0xff] }
  0xa2   : > { %v317_v39 = vpop.xlane.xlu1 %316  ;;  %v314_v40 = vpop.xlane.xlu0 %313 }
  0xa3   : > { %v370_v52 = vsel %vm369_vm4, %v368_v42, %v363_v45  ;;  %v490_v57 = vrot.slane %v317_v39, %v367_v33  ;;  %v486_v58 = vrot.slane %v314_v40, %v362_v36  ;;  %v341_v33 = vld [vmem:[%s1280_s2 + $0x28] sm:$0xff]  ;;  %v338_v36 = vld [vmem:[%s1280_s2 + $0x10] sm:$0xff] }
  0xa4   : > { %v377_v59 = vsel %vm376_vm5, %v375_v54, %v370_v52  ;;  %v744_v52 = vsub.s32 0, %v1155_v30 }
  0xa5   : > { %v384_v7 = vsel %vm383_vm6, %v382_v55, %v377_v59  ;;  %v491_v8 = vsel %vm369_vm4, %v490_v57, %v486_v58 }
  0xa6   : > { %v320_v49 = vpop.xlane.xlu1 %319  ;;  %v300_v51 = vpop.xlane.xlu0 %299 }
  0xa7   : > { %v310_v53 = vmul.f32 0.0625, %v300_v51  ;;  %v495_v63 = vrot.slane %v320_v49, %v374_v43 }
  0xa9   : > { %v389_v60 = vrot.slane %v310_v53, %v388_v50  ;;  %v496_v14 = vsel %vm376_vm5, %v495_v63, %v491_v8 }
  0xaa   : > { %v323_v61 = vpop.xlane.xlu1 %322  ;;  %v304_v62 = vpop.xlane.xlu0 %303 }
  0xab   : > { %v311_v3 = vmul.f32 0.0625, %v304_v62  ;;  %v500_v4 = vrot.slane %v323_v61, %v381_v46  ;;  %v391_v12 = vsel %vm390_vm7, %v389_v60, %v384_v7 }
  0xad   : > { %v396_v6 = vrot.slane %v311_v3, %v395_v56  ;;  %v501_v19 = vsel %vm383_vm6, %v500_v4, %v496_v14 }
  0xae   : > { %v326_v9 = vpop.xlane.xlu0 %325  ;;  %v329_v11 = vpop.xlane.xlu1 %328 }
  0xaf   : > { %v505_v15 = vrot.slane %v326_v9, %v388_v50  ;;  %v510_v16 = vrot.slane %v329_v11, %v395_v56  ;;  %v398_v17 = vsel %vm397_vm8, %v396_v6, %v391_v12 }
  0xb0   : > { %915 = vmatmul.mubr.msk.f32.vlgmr.msra.gmra.mxu0 %vm399_vm9, %v398_v17 }
  0xb1   : > { %v506_v21 = vsel %vm390_vm7, %v505_v15, %v501_v19  ;;  %933 = vmatpush3.msk.msra.mxu0 %vm589_vm10, %v351_v20  ;;  %964 = vmatprep.mubr.msk.f32.mxu0 %vm1026_vm3, %v1025_v18 }
  0xb2   : > { %v511_v22 = vsel %vm397_vm8, %v510_v16, %v506_v21  ;;  %934 = vmatprep.subr.mxu0 %v1025_v18 }
  0xb3   : > { %930 = vmatmul.mubr.msk.f32.vlgmr.msra.gmra.mxu1 %vm399_vm9, %v511_v22  ;;  %935 = vmatpush3.msra.mxu0 %v350_v23 }
  0xb4   : > { %968 = vmatpush3.msk.msra.mxu1 %vm589_vm10, %v351_v20  ;;  %936 = vmatprep.subr.mxu0 %v1025_v18 }
  0xb5   : > { %969 = vmatprep.subr.mxu1 %v1025_v18  ;;  %937 = vmatpush3.msra.mxu0 %v349_v24 }
  0xb6   : > { %970 = vmatpush3.msra.mxu1 %v350_v23  ;;  %938 = vmatprep.subr.mxu0 %v1025_v18 }
  0xb7   : > { %971 = vmatprep.subr.mxu1 %v1025_v18  ;;  %939 = vmatpush3.msra.mxu0 %v348_v25 }
  0xb8   : > { %972 = vmatpush3.msra.mxu1 %v349_v24  ;;  %940 = vmatprep.subr.mxu0 %v1025_v18 }
  0xb9   : > { %973 = vmatprep.subr.mxu1 %v1025_v18  ;;  %941 = vmatpush3.msra.mxu0 %v347_v26 }
  0xba   : > { %974 = vmatpush3.msra.mxu1 %v348_v25  ;;  %942 = vmatprep.subr.mxu0 %v1025_v18 }
  0xbb   : > { %975 = vmatprep.subr.mxu1 %v1025_v18  ;;  %943 = vmatpush3.msra.mxu0 %v346_v27 }
  0xbc   : > { %976 = vmatpush3.msra.mxu1 %v347_v26  ;;  %944 = vmatprep.subr.mxu0 %v1025_v18 }
  0xbd   : > { %977 = vmatprep.subr.mxu1 %v1025_v18  ;;  %945 = vmatpush3.msra.mxu0 %v345_v28 }
  0xbe   : > { %978 = vmatpush3.msra.mxu1 %v346_v27  ;;  %946 = vmatprep.subr.mxu0 %v1025_v18 }
  0xbf   : > { %979 = vmatprep.subr.mxu1 %v1025_v18  ;;  %947 = vmatpush3.msra.mxu0 %v344_v29 }
  0xc0   : > { %980 = vmatpush3.msra.mxu1 %v345_v28  ;;  %948 = vmatprep.subr.mxu0 %v1025_v18 }
  0xc1   : > { %981 = vmatprep.subr.mxu1 %v1025_v18  ;;  %949 = vmatpush3.msra.mxu0 %v343_v31 }
  0xc2   : > { %982 = vmatpush3.msra.mxu1 %v344_v29  ;;  %950 = vmatprep.subr.mxu0 %v1025_v18 }
  0xc3   : > { %983 = vmatprep.subr.mxu1 %v1025_v18  ;;  %951 = vmatpush3.msra.mxu0 %v342_v32 }
  0xc4   : > { %984 = vmatpush3.msra.mxu1 %v343_v31  ;;  %952 = vmatprep.subr.mxu0 %v1025_v18 }
  0xc5   : > { %985 = vmatprep.subr.mxu1 %v1025_v18  ;;  %953 = vmatpush3.msra.mxu0 %v341_v33 }
  0xc6   : > { %986 = vmatpush3.msra.mxu1 %v342_v32  ;;  %954 = vmatprep.subr.mxu0 %v1025_v18 }
  0xc7   : > { %987 = vmatprep.subr.mxu1 %v1025_v18  ;;  %955 = vmatpush3.msra.mxu0 %v340_v34 }
  0xc8   : > { %988 = vmatpush3.msra.mxu1 %v341_v33  ;;  %956 = vmatprep.subr.mxu0 %v1025_v18 }
  0xc9   : > { %989 = vmatprep.subr.mxu1 %v1025_v18  ;;  %957 = vmatpush3.msra.mxu0 %v339_v35 }
  0xca   : > { %990 = vmatpush3.msra.mxu1 %v340_v34  ;;  %958 = vmatprep.subr.mxu0 %v1025_v18 }
  0xcb   : > { %991 = vmatprep.subr.mxu1 %v1025_v18  ;;  %959 = vmatpush3.msra.mxu0 %v338_v36 }
  0xcc   : > { %992 = vmatpush3.msra.mxu1 %v339_v35  ;;  %960 = vmatprep.subr.mxu0 %v1025_v18 }
  0xcd   : > { %993 = vmatprep.subr.mxu1 %v1025_v18  ;;  %999 = vmatprep.mubr.msk.f32.mxu1 %vm1026_vm3, %v1025_v18 }
  0xce   : > { %994 = vmatpush3.msra.mxu1 %v338_v36  ;;  %961 = vmatpush3.msra.mxu0 %v337_v37 }
  0xcf   : > { %995 = vmatprep.subr.mxu1 %v1025_v18  ;;  %962 = vmatprep.subr.mxu0 %v1025_v18 }
  0xd0   : > { %996 = vmatpush3.msra.mxu1 %v337_v37  ;;  %963 = vmatpush3.msra.mxu0 %v336_v38 }
  0xd1   : > { %997 = vmatprep.subr.mxu1 %v1025_v18 }
  0xd2   : > { %998 = vmatpush3.msra.mxu1 %v336_v38 }
 0x170   : > { %v472_v39 = vpop.f32.mrf.mxu0 }
 0x171   : > { %v476_v40 = vmax.f32 %v472_v39, 0.0 }
 0x172   : > { %v916_v41 = vpop.f32.mrf.mxu0 }
 0x173   : > { %v580_v42 = vpop.f32.mrf.mxu1  ;;  %1000 = vmatmul.mubr.msk.f32.vlgmr.msra.gmra.mxu1 %vm585_vm11, %v476_v40 }
 0x174   : > { %v584_v43 = vmax.f32 %v580_v42, 0.0 }
 0x175   : > { %v931_v44 = vpop.f32.mrf.mxu1 }
 0x176   : > { %965 = vmatmul.mubr.msk.f32.vlgmr.msra.gmra.mxu0 %vm585_vm11, %v584_v43 }
 0x233   : > { %v732_v45 = vpop.f32.mrf.mxu1 }
 0x235   : > { %v1001_v46 = vpop.f32.mrf.mxu1 }
 0x236   : > { %v659_v47 = vpop.f32.mrf.mxu0 }
 0x237   : > { %v733_v48 = vadd.f32 %v732_v45, %v659_v47 }
 0x238   : > { %v966_v49 = vpop.f32.mrf.mxu0 }
 0x239   : > { %v851_v50 = vmul.f32 -1.442695, %v733_v48 }
 0x23b   : > { %1013 = vpow2.f32 %v851_v50 }
 0x248   : > { %v1014_v18 = vpop.eup %1013 }
 0x249   : > { %v739_v51 = vadd.f32 1.0, %v1014_v18 }
 0x24b   : > { %1015 = vrcp.f32 %v739_v51 }
 0x258   : > { %v1016_v53 = vpop.eup %1015 }
 0x259   : > { %v745_v54 = vrot.slane %v1016_v53, %v744_v52 }
 0x25b   : > { %751 = vbcast.lane.b32.xlu1 %v745_v54, 264  ;;  %747 = vbcast.lane.b32.xlu0 %v745_v54, 256 }
 0x25f   : > { %755 = vbcast.lane.b32.xlu1 %v745_v54, 272  ;;  %763 = vbcast.lane.b32.xlu0 %v745_v54, 288 }
 0x263   : > { %759 = vbcast.lane.b32.xlu1 %v745_v54, 280 }
 0x267   : > { %767 = vbcast.lane.b32.xlu1 %v745_v54, 296 }
 0x2cd   : > { %v752_v55 = vpop.permute.xlu1 %751  ;;  %v748_v56 = vpop.permute.xlu0 %747 }
 0x2ce   : > { %v770_v57 = vmul.f32 %v752_v55, %v1093_v5  ;;  %v769_v58 = vmul.f32 %v748_v56, %v1085_v1 }
 0x2d0   : > { %776 = vst.msk [vmem:[%s278_s6 + $0x8] sm:$0xff] %vm285_vm0, %v770_v57  ;;  %775 = vst.msk [vmem:[%s278_s6] sm:$0xff] %vm285_vm0, %v769_v58 }
 0x2d1   : > { %v756_v30 = vpop.permute.xlu1 %755  ;;  %v764_v59 = vpop.permute.xlu0 %763 }
 0x2d2   : > { %v771_v60 = vmul.f32 %v756_v30, %v1083_v0  ;;  %v773_v61 = vmul.f32 %v764_v59, %v1103_v10 }
 0x2d4   : > { %777 = vst.msk [vmem:[%s278_s6 + $0x10] sm:$0xff] %vm285_vm0, %v771_v60  ;;  %779 = vst.msk [vmem:[%s278_s6 + $0x20] sm:$0xff] %vm285_vm0, %v773_v61 }
 0x2d5   : > { %v760_v62 = vpop.permute.xlu1 %759 }
 0x2d6   : > { %v772_v63 = vmul.f32 %v760_v62, %v1087_v2 }
 0x2d8   : > { %778 = vst.msk [vmem:[%s278_s6 + $0x18] sm:$0xff] %vm285_vm0, %v772_v63 }
 0x2d9   : > { %v768_v1 = vpop.permute.xlu1 %767 }
 0x2da   : > { %v774_v5 = vmul.f32 %v768_v1, %v1109_v13 }
 0x2dc   : > { %780 = vst.msk [vmem:[%s278_s6 + $0x28] sm:$0xf] %vm301_vm1, %v774_v5 }
 0x2dd PF: > { %s17_s24 = sadd.s32 1, %s1023_s24  }
 0x2de   : > { %p14_p4 = scmp.ge.s32.totalorder %s17_s24, 4  }
 0x2e0   :  { %16 = sbr.rel (!%p14_p4) target bundleno = 1 (0x1), region = 78 }

</bundles_post_ra>
